<compile_context>
chip_gen: v7x
topology: tpu7x:2x2x1
jax: 0.10.0
libtpu: 0.0.40
codegen_flags: <defaults>
</compile_context>

<pallas_src>
import jax
import jax.numpy as jnp
from jax.experimental import pallas as pl
from jax.experimental.pallas import tpu as pltpu


def _round_up(n, m):
    return ((n + m - 1) // m) * m


def logreg_kernel(x_ref, w_ref, b_ref, o_ref):
    # One batch tile per grid step.  w is lane-dense (1, D) and VMEM-resident.
    # VPU multiply + XLU lane-reduce matvec; f32 accumulation and epilogue.
    x = x_ref[...].astype(jnp.float32)                     # (tile_b, D)
    w = w_ref[...].astype(jnp.float32)                     # (1, D), broadcast over rows
    z = jnp.sum(x * w, axis=-1, keepdims=True) + b_ref[0, 0]   # (tile_b, 1) f32
    o_ref[...] = jax.nn.sigmoid(z).astype(o_ref.dtype)


def _vmem_budgets():
    """Returns (x double-buffer budget, vmem_limit_bytes), gated by generation."""
    cap = None
    try:
        cap = getattr(pltpu.get_tpu_info(), "vmem_capacity_bytes", None)
    except Exception:
        cap = None
    if cap is None:
        cap = 64 << 20                       # conservative fallback (v7x per-TC VMEM)
    if cap >= (96 << 20):                    # v5e / v6e: 128 MiB physical VMEM
        return 32 << 20, 64 << 20
    return 16 << 20, 40 << 20                # v7x: 64 MiB per TensorCore


def _choose_tile_b(B, d_lane, itemsize, x_budget_bytes, max_tile_b=None):
    # bf16 packs two rows per sublane -> 16-row alignment; f32 -> 8.
    sub = 16 if itemsize == 2 else 8
    cap = (x_budget_bytes // (2 * d_lane * itemsize)) // sub * sub
    cap = max(sub, cap)
    if max_tile_b is not None:
        cap = max(sub, min(cap, (max_tile_b // sub) * sub))
    if B <= 2 * sub and B <= cap:
        return B                             # one block == full batch dim (always legal)
    # Biggest budget-fitting tile, but keep grid >= 2 so both v7x TensorCores get work.
    return min(cap, _round_up(pl.cdiv(B, 2), sub))


def logistic_regression(x, weight, bias, *, max_tile_b=None):
    """sigmoid(x @ weight.T + bias).

    x: (B, D) float32 or bfloat16, weight: (1, D) (nn.Linear convention),
    bias: (1,).  Returns (B, 1) float32.
    """
    B, D = x.shape
    assert weight.shape == (1, D)

    itemsize = jnp.dtype(x.dtype).itemsize
    d_lane = _round_up(D, 128)               # VMEM lane footprint of one row
    x_budget, vmem_limit = _vmem_budgets()
    tile_b = _choose_tile_b(B, d_lane, itemsize, x_budget, max_tile_b)
    grid = (pl.cdiv(B, tile_b),)             # partial last block handled by Pallas

    # TODO(synk): for in_size so wide that even an 8/16-row tile overflows VMEM,
    # a K-reduction grid axis with a VMEM accumulator would be required.
    assert 2 * tile_b * d_lane * itemsize <= vmem_limit, \
        "in_size too wide for single-pass batch tiles"

    b = jnp.asarray(bias, jnp.float32).reshape(1, 1)

    out = pl.pallas_call(
        logreg_kernel,
        out_shape=jax.ShapeDtypeStruct((B, 1), jnp.float32),
        grid_spec=pltpu.PrefetchScalarGridSpec(
            num_scalar_prefetch=0,
            grid=grid,
            in_specs=[
                # x: streamed batch tiles, double-buffered by the pipeline.
                pl.BlockSpec((tile_b, D), lambda i: (i, 0)),
                # weight: same block every step -> stays resident in VMEM.
                pl.BlockSpec((1, D), lambda i: (0, 0)),
                # bias: scalar in SMEM.
                pl.BlockSpec((1, 1), lambda i: (0, 0), memory_space=pltpu.SMEM),
            ],
            out_specs=pl.BlockSpec((tile_b, 1), lambda i: (i, 0)),
        ),
        compiler_params=pltpu.CompilerParams(
            dimension_semantics=("parallel",),   # megacore sharding on v7x
            vmem_limit_bytes=vmem_limit,
        ),
    )(x, weight, b)
    return out


if __name__ == "__main__":
    key = jax.random.PRNGKey(0)
    kx, kw, kb = jax.random.split(key, 3)

    batch, in_size = 8, 32
    bound = 1.0 / jnp.sqrt(jnp.float32(in_size))
    x = jax.random.normal(kx, (batch, in_size), dtype=jnp.float32)
    # Deterministic params (mimics nn.Linear uniform(-1/sqrt(in), 1/sqrt(in))).
    w = jax.random.uniform(kw, (1, in_size), dtype=jnp.float32, minval=-bound, maxval=bound)
    b = jax.random.uniform(kb, (1,), dtype=jnp.float32, minval=-bound, maxval=bound)

    # --- f32 path (exact semantics check) ---
    y = logistic_regression(x, w, b)
    jax.block_until_ready(y)
    y_ref = jax.nn.sigmoid(x @ w.T + b)
    assert y.shape == (batch, 1)
    assert jnp.allclose(y, y_ref, atol=1e-5), "f32 mismatch vs reference"

    # --- bf16 input path (halved HBM traffic; f32 accumulation in-kernel) ---
    xb, wb = x.astype(jnp.bfloat16), w.astype(jnp.bfloat16)
    yb = logistic_regression(xb, wb, b)
    jax.block_until_ready(yb)
    yb_ref = jax.nn.sigmoid(xb.astype(jnp.float32) @ wb.astype(jnp.float32).T + b)
    assert jnp.allclose(yb, yb_ref, atol=1e-4), "bf16 mismatch vs reference"

    # --- multi-tile pipelining + unaligned B/D + partial last block (no x padding) ---
    B2, D2 = 300, 200
    x2 = jax.random.normal(kx, (B2, D2), dtype=jnp.float32)
    w2 = jax.random.uniform(kw, (1, D2), dtype=jnp.float32, minval=-0.1, maxval=0.1)
    y2 = logistic_regression(x2, w2, b, max_tile_b=128)    # grid=(3,), partial last tile
    jax.block_until_ready(y2)
    y2_ref = jax.nn.sigmoid(x2 @ w2.T + b)
    assert y2.shape == (B2, 1)
    assert jnp.allclose(y2, y2_ref, atol=1e-5), "tiled-path mismatch vs reference"

    # --- default tile chooser (budget-sized tiles, grid >= 2) ---
    y3 = logistic_regression(x2, w2, b)
    jax.block_until_ready(y3)
    assert jnp.allclose(y3, y2_ref, atol=1e-5), "default-tile mismatch vs reference"

    print("KERNEL_OK")
</pallas_src>

<mosaic_0001>
module attributes {stable_mosaic.version = 11 : i64} {
  func.func @logreg_kernel(%arg0: i32, %arg1: memref<8x32xf32, #tpu.memory_space<vmem>>, %arg2: memref<1x32xf32, #tpu.memory_space<vmem>>, %arg3: memref<1x1xf32, #tpu.memory_space<smem>>, %arg4: memref<8x1xf32, #tpu.memory_space<vmem>>) attributes {dimension_semantics = [#tpu.dimension_semantics<parallel>], iteration_bounds = array<i64: 1>, scalar_prefetch = 0 : i64, scratch_operands = 0 : i64, tpu.core_type = #tpu.core_type<tc>, window_params = [{transform_indices = @transform_0, window_bounds = array<i64: 8, 32>}, {pipeline_mode = #tpu.pipeline_mode<synchronous>, transform_indices = @transform_1, window_bounds = array<i64: 1, 32>}, {transform_indices = @transform_2, window_bounds = array<i64: 1, 1>}, {transform_indices = @transform_3, window_bounds = array<i64: 8, 1>}]} {
    %c0 = arith.constant 0 : index
    %c0_0 = arith.constant 0 : index
    %0 = vector.load %arg1[%c0, %c0_0] : memref<8x32xf32, #tpu.memory_space<vmem>>, vector<8x32xf32>
    %c0_1 = arith.constant 0 : index
    %c0_2 = arith.constant 0 : index
    %1 = vector.load %arg2[%c0_1, %c0_2] : memref<1x32xf32, #tpu.memory_space<vmem>>, vector<1x32xf32>
    %2 = vector.broadcast %1 : vector<1x32xf32> to vector<8x32xf32>
    %3 = arith.mulf %0, %2 : vector<8x32xf32>
    %cst = arith.constant dense<0.000000e+00> : vector<8xf32>
    %4 = vector.multi_reduction <add>, %3, %cst [1] : vector<8x32xf32> to vector<8xf32>
    %5 = vector.shape_cast %4 : vector<8xf32> to vector<8x1xf32>
    %c0_3 = arith.constant 0 : index
    %c0_4 = arith.constant 0 : index
    %6 = memref.load %arg3[%c0_3, %c0_4] : memref<1x1xf32, #tpu.memory_space<smem>>
    %7 = vector.broadcast %6 : f32 to vector<8x1xf32>
    %8 = arith.addf %5, %7 : vector<8x1xf32>
    %9 = arith.negf %8 : vector<8x1xf32>
    %10 = math.exp %9 : vector<8x1xf32>
    %cst_5 = arith.constant 1.000000e+00 : f32
    %11 = vector.broadcast %cst_5 : f32 to vector<8x1xf32>
    %12 = arith.addf %11, %10 : vector<8x1xf32>
    %13 = arith.divf %11, %12 : vector<8x1xf32>
    %c0_6 = arith.constant 0 : index
    %c0_7 = arith.constant 0 : index
    %14 = vector.load %arg4[%c0_6, %c0_7] : memref<8x1xf32, #tpu.memory_space<vmem>>, vector<8x1xf32>
    tpu.vector_store %arg4[%c0_6, %c0_7], %13 {strides = array<i32>} : memref<8x1xf32, #tpu.memory_space<vmem>>, vector<8x1xf32>,
    return
  }
  func.func @transform_0(%arg0: i32) -> (i32, i32) {
    %c0_i32 = arith.constant 0 : i32
    %c0_i32_0 = arith.constant 0 : i32
    return %arg0, %c0_i32 : i32, i32
  }
  func.func @transform_1(%arg0: i32) -> (i32, i32) {
    %c0_i32 = arith.constant 0 : i32
    %c0_i32_0 = arith.constant 0 : i32
    %c0_i32_1 = arith.constant 0 : i32
    return %c0_i32, %c0_i32_0 : i32, i32
  }
  func.func @transform_2(%arg0: i32) -> (i32, i32) {
    %c0_i32 = arith.constant 0 : i32
    %c0_i32_0 = arith.constant 0 : i32
    %c0_i32_1 = arith.constant 0 : i32
    return %c0_i32, %c0_i32_0 : i32, i32
  }
  func.func @transform_3(%arg0: i32) -> (i32, i32) {
    %c0_i32 = arith.constant 0 : i32
    %c0_i32_0 = arith.constant 0 : i32
    return %arg0, %c0_i32 : i32, i32
  }
}

</mosaic_0001>

<bundles_post_ra>
// kernel: tpu_custom_call.1
= control target key start
LH: loop header
LB: loop body
LE: loop exit
PB: predicated region body
PF: predicated region fallthrough
CT: control target
= control target key end

     0   :  { %9 = vsyncpa [#allocation4], 0  ;;  %s87_s12 = smov [#allocation3]   ;;  %s129_s0 = inlined_call_operand.hbm [shape: f32[8,32], index: 0, kind: input, shape index: {}]   ;;  %s130_s1 = inlined_call_operand.vmem [shape: f32[1,32], index: 1, kind: input, shape index: {}]   ;;  %s131_s2 = inlined_call_operand.<no memory space> [shape: f32[1,1], index: 2, kind: input, shape index: {}]   ;;  %s132_s3 = inlined_call_operand.vmem [shape: f32[8,1], index: 3, kind: output, shape index: {}]  }
   0x1   :  { %s16_s13 = sshll.u32 %s87_s12, 4  ;;  %s63_s16 = scalar_lea.hbm %s129_s0, 128  ;;  %s17_s13 = int_to_ptr.vmem [resolvable:$true] %s16_s13 }
   0x2   :  { %p64_p0 = scmp.ne.s32.totalorder %s129_s0, %s63_s16  ;;  %p67_p1 = scmp.lt.u32.totalorder %s63_s16, %s129_s0 }
   0x4   :  { %p69_p2 = pnand %p67_p1, %p64_p0 }
   0x6   :  { %72 = shalt.err (!%p69_p2)
}
   0x7   :  { %s73_s21 = scalar_lea.vmem %s17_s13, 128  ;;  %p78_p4 = scmp.lt.s32.totalorder %s17_s13, %s17_s13 }
   0x8   :  { %p74_p3 = scmp.ne.s32.totalorder %s17_s13, %s73_s21  ;;  %p79_p5 = scmp.lt.s32.totalorder %s73_s21, %s73_s21 }
   0xa   :  { %p80_p6 = por %p79_p5, %p78_p4 }
   0xc   :  { %p81_p7 = pnand %p80_p6, %p74_p3 }
   0xe   :  { %84 = shalt.err (!%p81_p7)
}
   0xf   :  { %19 = dma.hbm_to_vmem [thread:$0]  %s129_s0, 128, %s17_s13, [#allocation4]  }
  0x10   :  { %85 = dma.done.wait [#allocation4], 128  }
  0x11   :  { %86 = vsyncadd [#allocation4], 4294967168  ;;  %v27_v0 = vld [vmem:[#allocation3] sm:$0xff]  ;;  %vm36_vm0 = vcmask 261120   ;;  %v41_v4 = vstv %s131_s2  ;;  %vm49_vm1 = vcmask 7168  }
  0x12   :  { %v56_v1 = vld [vmem:[%s130_s1] ss:$0 sm:$0xff] }
  0x13   :  { %v35_v2 = vmul.f32 %v56_v1, %v27_v0 }
  0x15   :  { %v37_v3 = vsel %vm36_vm0, %v35_v2, 0.0 }
  0x16   :  { %38 = vadd.xlane.f32.xlu0 %v37_v3 }
  0xa3   :  { %v39_v5 = vpop.xlane.xlu0 %38 }
  0xa4   :  { %v42_v6 = vadd.f32 %v41_v4, %v39_v5 }
  0xa6   :  { %v57_v7 = vmul.f32 -1.442695, %v42_v6 }
  0xa8   :  { %59 = vpow2.f32 %v57_v7 }
  0xb2   :  { %v60_v8 = vpop.eup %59 }
  0xb3   :  { %v46_v9 = vadd.f32 1.0, %v60_v8 }
  0xb5   :  { %61 = vrcp.f32 %v46_v9 }
  0xbf   :  { %v62_v10 = vpop.eup %61 }
  0xc0   :  { %50 = vst.msk [vmem:[%s132_s3] sm:$0xff] %vm49_vm1, %v62_v10 }
  0xc1   :  { %55 = vsyncpa [#allocation4], 1 }

</bundles_post_ra>
